<compile_context>
chip_gen: v7x
topology: tpu7x:2x2x1
jax: 0.10.0
libtpu: 0.0.40
codegen_flags: <defaults>
</compile_context>

<pallas_src>
import functools
import math

import jax
import jax.numpy as jnp
from jax import lax
from jax.experimental import pallas as pl
from jax.experimental.pallas import tpu as pltpu


def _attention_kernel(*refs, masked: bool, t_chunk: int):
    """One grid step: a block of bB batches, full sequence T, full hidden H.

    Refs (all VMEM):
      hidden_ref : (bB, H)        decoder hidden state, batch-major
      enc_ref    : (T, bB, H)     encoder outputs, time-major (as produced upstream)
      w_ref      : (2H, H)        attn.weight^T; rows [0,H) hit hidden, [H,2H) hit enc
      bias_ref   : (1, H)
      v_ref      : (1, H)
      srclen_ref : (bB, 1) int32  (only when masked)
      out_ref    : (bB, T)        softmax over T, batch-major / lane-dense
    """
    if masked:
        hidden_ref, enc_ref, w_ref, bias_ref, v_ref, srclen_ref, out_ref = refs
    else:
        hidden_ref, enc_ref, w_ref, bias_ref, v_ref, out_ref = refs
        srclen_ref = None

    T, bB, H = enc_ref.shape

    # Hidden half of Linear(2H->H) + bias, once per block: (bB,H) @ (H,H).
    s1 = jnp.dot(hidden_ref[...], w_ref[0:H, :],
                 preferred_element_type=jnp.float32)                 # (bB, H)
    s1 = s1 + bias_ref[...]                                          # bias folded once

    w_enc = w_ref[H:, :]                                             # (H, H)
    v_row = v_ref[...]                                               # (1, H)

    def score_chunk(t0, nrows):
        # Encoder half over a chunk of `nrows` time steps.
        enc_c = enc_ref[pl.ds(t0, nrows), :, :]                      # (nrows, bB, H)
        # bB is a multiple of 8 (or == B), so this flatten is a free
        # reinterpretation — no sublane relayout.
        s2 = jnp.dot(enc_c.reshape(nrows * bB, H), w_enc,
                     preferred_element_type=jnp.float32)             # (nrows*bB, H)
        energy = jnp.tanh(s2.reshape(nrows, bB, H) + s1[None, :, :])
        sc = jnp.sum(energy * v_row, axis=-1)                        # (nrows, bB)
        return sc.T                                                  # (bB, nrows)

    if t_chunk >= T:
        # Small block: single pass, keep scores in registers.
        scores = score_chunk(0, T)                                   # (bB, T)
    else:
        # Chunk over T so the f32 s2/energy temporaries stay bounded; scores
        # land directly in the lane-dense output block.
        n_full = T // t_chunk

        def body(c, carry):
            t0 = pl.multiple_of(c * t_chunk, t_chunk)
            out_ref[:, pl.ds(t0, t_chunk)] = score_chunk(t0, t_chunk)
            return carry

        lax.fori_loop(0, n_full, body, 0)
        rem = T - n_full * t_chunk
        if rem:
            out_ref[:, pl.ds(n_full * t_chunk, rem)] = score_chunk(
                n_full * t_chunk, rem)
        scores = out_ref[...]                                        # (bB, T)

    if masked:
        t_idx = lax.broadcasted_iota(jnp.int32, (bB, T), 1)
        scores = jnp.where(t_idx >= srclen_ref[...], jnp.float32(-1e18), scores)

    # Softmax over T (lane axis).  Exact divide: denom is only (bB, 1).
    m = jnp.max(scores, axis=1, keepdims=True)                       # (bB, 1)
    ex = jnp.exp(scores - m)
    denom = jnp.sum(ex, axis=1, keepdims=True)
    out_ref[...] = (ex / denom).astype(out_ref.dtype)


def _vmem_capacity_bytes():
    """Best-effort physical VMEM query; conservative (v7x-sized) fallback."""
    try:
        return int(pltpu.get_tpu_info().vmem_capacity_bytes)
    except Exception:
        return 64 * 2**20


def _choose_batch_block(B, T, H, itemsize, vmem_cap):
    """Pick bB: a multiple of 8 (or == B when B < 8) so the in-kernel flatten is
    relayout-free.  Encoder buffer budget scales with physical VMEM (bigger on
    128 MiB v5e/v6e, conservative on 64 MiB v7x), and >=2 grid steps are kept
    for B >= 16 so v7x's two TensorCores both get work."""
    if B <= 8:
        return B
    big_vmem = vmem_cap >= 100 * 2**20
    enc_budget = (24 if big_vmem else 8) * 2**20      # per encoder buffer
    bb_cap = 1024 if big_vmem else 256
    if B >= 16:
        bb_cap = min(bb_cap, max(8, (B // 2) // 8 * 8))
    else:
        bb_cap = 8
    bb = 8
    while bb * 2 <= bb_cap and bb * 2 * T * H * itemsize <= enc_budget:
        bb *= 2
    return bb


def _choose_t_chunk(T, bB, H):
    """Chunk size over T so per-chunk f32 temporaries (s2 + energy) stay ~4 MiB.
    Chunks are multiples of 128 so dynamic lane-dim stores stay aligned."""
    budget = 4 * 2**20
    per_row = 2 * bB * H * 4
    tc = budget // max(per_row, 1)
    if tc >= T or T <= 128:
        return T
    tc = max(128, (tc // 128) * 128)
    return min(tc, T)


def attention_forward(hidden, encoder_outputs, W, bias, v, src_len=None,
                      t_chunk_override=None):
    """hidden: (1, B, H); encoder_outputs: (T, B, H) (time-major, consumed as-is);
    W: (H, 2H) = nn.Linear(2H, H).weight; bias: (H,); v: (H,);
    src_len: optional (B,) int32. Returns (B, 1, T) float32 attention weights."""
    assert hidden.shape[0] == 1, "kernel assumes layers*directions == 1"
    T, B, H = encoder_outputs.shape

    hidden2d = hidden[0]                         # (B, H) -- cheap squeeze, no big transpose
    w_t = jnp.asarray(W).T                       # (2H, H): rows [0,H) hidden half, [H,2H) enc half
    bias2d = jnp.asarray(bias).reshape(1, H)
    v2d = jnp.asarray(v).reshape(1, H)

    itemsize = jnp.dtype(encoder_outputs.dtype).itemsize
    vmem_cap = _vmem_capacity_bytes()
    bB = _choose_batch_block(B, T, H, itemsize, vmem_cap)
    t_chunk = int(t_chunk_override) if t_chunk_override else _choose_t_chunk(T, bB, H)
    grid = (pl.cdiv(B, bB),)

    in_specs = [
        pl.BlockSpec((bB, H), lambda i: (i, 0)),          # hidden (batch-major)
        pl.BlockSpec((T, bB, H), lambda i: (0, i, 0)),    # encoder outputs (time-major, no transpose)
        pl.BlockSpec((2 * H, H), lambda i: (0, 0)),       # fused Linear weight (transposed)
        pl.BlockSpec((1, H), lambda i: (0, 0)),           # bias
        pl.BlockSpec((1, H), lambda i: (0, 0)),           # v
    ]
    operands = [hidden2d, encoder_outputs, w_t, bias2d, v2d]

    masked = src_len is not None
    if masked:
        sl = jnp.asarray(src_len, jnp.int32).reshape(B, 1)
        in_specs.append(pl.BlockSpec((bB, 1), lambda i: (i, 0)))
        operands.append(sl)

    # Scoped-VMEM sizing: double-buffered blocks + resident weights + the f32
    # in-kernel temporaries (s2/energy per chunk, softmax temps).
    enc_blk = T * bB * H * itemsize
    out_blk = bB * T * 4
    hid_blk = bB * H * itemsize
    weights = (2 * H * H + 2 * H) * jnp.dtype(w_t.dtype).itemsize
    temps = 2 * t_chunk * bB * H * 4 + 3 * out_blk
    need = 2 * (enc_blk + out_blk + hid_blk) + 2 * weights + temps
    vmem_limit = int(min(0.75 * vmem_cap, max(32 * 2**20, 2 * need)))
    vmem_limit = max(vmem_limit, min(int(0.9 * vmem_cap), need + (4 << 20)))

    out_bt = pl.pallas_call(
        functools.partial(_attention_kernel, masked=masked, t_chunk=t_chunk),
        out_shape=jax.ShapeDtypeStruct((B, T), jnp.float32),
        grid=grid,
        in_specs=in_specs,
        out_specs=pl.BlockSpec((bB, T), lambda i: (i, 0)),   # batch-major, lane-dense
        compiler_params=pltpu.CompilerParams(
            dimension_semantics=("parallel",),
            vmem_limit_bytes=vmem_limit),
    )(*operands)

    # (B, T) -> (B, 1, T): pure metadata expand, no transpose anywhere.
    return out_bt[:, None, :]


def _reference(hidden, encoder_outputs, W, bias, v, src_len=None):
    """Plain-JAX mirror of the torch forward for a correctness check."""
    T, B, H = encoder_outputs.shape
    Hrep = jnp.transpose(jnp.tile(hidden, (T, 1, 1)), (1, 0, 2))      # (B,T,H)
    enc = jnp.transpose(encoder_outputs, (1, 0, 2))                   # (B,T,H)
    x = jnp.concatenate([Hrep, enc], axis=2)                          # (B,T,2H)
    energy = jnp.tanh(
        jnp.einsum("btk,hk->bth", x, W, precision=lax.Precision.HIGHEST) + bias)
    scores = jnp.einsum("h,bth->bt", v, energy,
                        precision=lax.Precision.HIGHEST)              # (B,T)
    if src_len is not None:
        t_idx = jnp.arange(T)[None, :]
        scores = jnp.where(t_idx >= src_len[:, None], -1e18, scores)
    return jax.nn.softmax(scores, axis=1)[:, None, :]                 # (B,1,T)


def _make_params(key, H):
    k_w, k_b, k_v = jax.random.split(key, 3)
    lim = 1.0 / math.sqrt(2 * H)
    W = jax.random.uniform(k_w, (H, 2 * H), jnp.float32, minval=-lim, maxval=lim)
    bias = jax.random.uniform(k_b, (H,), jnp.float32, minval=-lim, maxval=lim)
    v = jax.random.normal(k_v, (H,), dtype=jnp.float32) * (1.0 / math.sqrt(H))
    return W, bias, v


if __name__ == "__main__":
    key = jax.random.PRNGKey(0)
    attn = jax.jit(attention_forward, static_argnames=("t_chunk_override",))

    # ---- Test 1: small shapes, unmasked (mask-free kernel variant) ----------
    B, T, H = 2, 8, 32
    k0, k_h, k_e, k_p = jax.random.split(key, 4)
    hidden = jax.random.normal(k_h, (1, B, H), dtype=jnp.float32)
    encoder_outputs = jax.random.normal(k_e, (T, B, H), dtype=jnp.float32)
    W, bias, v = _make_params(k_p, H)

    out = jax.block_until_ready(attn(hidden, encoder_outputs, W, bias, v, None))
    ref = _reference(hidden, encoder_outputs, W, bias, v, None)
    assert out.shape == (B, 1, T)
    assert jnp.allclose(out, ref, atol=1e-3, rtol=1e-3)
    # Exact softmax divide -> rows sum to 1 up to f32 rounding.
    assert jnp.allclose(jnp.sum(out, axis=-1), 1.0, atol=1e-5)

    # ---- Test 2: small shapes, masked ---------------------------------------
    src_len = jnp.array([5, 8], dtype=jnp.int32)
    out_m = jax.block_until_ready(attn(hidden, encoder_outputs, W, bias, v, src_len))
    ref_m = _reference(hidden, encoder_outputs, W, bias, v, src_len)
    assert jnp.allclose(out_m, ref_m, atol=1e-3, rtol=1e-3)
    assert jnp.allclose(jnp.sum(out_m, axis=-1), 1.0, atol=1e-5)

    # ---- Test 3: multi-block batch (bB=8, 2 grid steps) + in-kernel T chunking
    B2, T2, H2 = 16, 256, 64
    k_h2, k_e2, k_l2, k_p2 = jax.random.split(k0, 4)
    hidden2 = jax.random.normal(k_h2, (1, B2, H2), dtype=jnp.float32)
    enc2 = jax.random.normal(k_e2, (T2, B2, H2), dtype=jnp.float32)
    W2, bias2, v2 = _make_params(k_p2, H2)
    src_len2 = jax.random.randint(k_l2, (B2,), 1, T2 + 1).astype(jnp.int32)

    out2 = jax.block_until_ready(
        attn(hidden2, enc2, W2, bias2, v2, src_len2, t_chunk_override=128))
    ref2 = _reference(hidden2, enc2, W2, bias2, v2, src_len2)
    assert out2.shape == (B2, 1, T2)
    assert jnp.allclose(out2, ref2, atol=1e-3, rtol=1e-3)
    assert jnp.allclose(jnp.sum(out2, axis=-1), 1.0, atol=1e-5)

    print("KERNEL_OK")
</pallas_src>

<mosaic_0001>
module attributes {stable_mosaic.version = 11 : i64} {
  func.func @_attention_kernel(%arg0: i32, %arg1: memref<2x32xf32, #tpu.memory_space<vmem>>, %arg2: memref<8x2x32xf32, #tpu.memory_space<vmem>>, %arg3: memref<64x32xf32, #tpu.memory_space<vmem>>, %arg4: memref<1x32xf32, #tpu.memory_space<vmem>>, %arg5: memref<1x32xf32, #tpu.memory_space<vmem>>, %arg6: memref<2x8xf32, #tpu.memory_space<vmem>>) attributes {dimension_semantics = [#tpu.dimension_semantics<parallel>], iteration_bounds = array<i64: 1>, scalar_prefetch = 0 : i64, scratch_operands = 0 : i64, tpu.core_type = #tpu.core_type<tc>, window_params = [{transform_indices = @transform_0, window_bounds = array<i64: 2, 32>}, {transform_indices = @transform_1, window_bounds = array<i64: 8, 2, 32>}, {pipeline_mode = #tpu.pipeline_mode<synchronous>, transform_indices = @transform_2, window_bounds = array<i64: 64, 32>}, {pipeline_mode = #tpu.pipeline_mode<synchronous>, transform_indices = @transform_3, window_bounds = array<i64: 1, 32>}, {pipeline_mode = #tpu.pipeline_mode<synchronous>, transform_indices = @transform_4, window_bounds = array<i64: 1, 32>}, {transform_indices = @transform_5, window_bounds = array<i64: 2, 8>}]} {
    %c0 = arith.constant 0 : index
    %c0_0 = arith.constant 0 : index
    %0 = vector.load %arg1[%c0, %c0_0] : memref<2x32xf32, #tpu.memory_space<vmem>>, vector<2x32xf32>
    %c0_1 = arith.constant 0 : index
    %c0_2 = arith.constant 0 : index
    %1 = vector.load %arg3[%c0_1, %c0_2] : memref<64x32xf32, #tpu.memory_space<vmem>>, vector<32x32xf32>
    %cst = arith.constant dense<0.000000e+00> : vector<2x32xf32>
    %2 = tpu.matmul %0, %1, %cst {dimension_numbers = #tpu.dot_dimension_numbers<[1], [0], [0], [1], [0, 0, 1, 1], [], []>} : vector<2x32xf32>, vector<32x32xf32>, vector<2x32xf32> -> vector<2x32xf32>
    %c0_3 = arith.constant 0 : index
    %c0_4 = arith.constant 0 : index
    %3 = vector.load %arg4[%c0_3, %c0_4] : memref<1x32xf32, #tpu.memory_space<vmem>>, vector<1x32xf32>
    %4 = vector.broadcast %3 : vector<1x32xf32> to vector<2x32xf32>
    %5 = arith.addf %2, %4 : vector<2x32xf32>
    %c32 = arith.constant 32 : index
    %c0_5 = arith.constant 0 : index
    %6 = vector.load %arg3[%c32, %c0_5] : memref<64x32xf32, #tpu.memory_space<vmem>>, vector<32x32xf32>
    %c0_6 = arith.constant 0 : index
    %c0_7 = arith.constant 0 : index
    %7 = vector.load %arg5[%c0_6, %c0_7] : memref<1x32xf32, #tpu.memory_space<vmem>>, vector<1x32xf32>
    %c0_8 = arith.constant 0 : index
    %c0_9 = arith.constant 0 : index
    %c0_10 = arith.constant 0 : index
    %8 = vector.load %arg2[%c0_8, %c0_9, %c0_10] : memref<8x2x32xf32, #tpu.memory_space<vmem>>, vector<8x2x32xf32>
    %9 = vector.shape_cast %8 : vector<8x2x32xf32> to vector<16x32xf32>
    %cst_11 = arith.constant dense<0.000000e+00> : vector<16x32xf32>
    %10 = tpu.matmul %9, %6, %cst_11 {dimension_numbers = #tpu.dot_dimension_numbers<[1], [0], [0], [1], [0, 0, 1, 1], [], []>} : vector<16x32xf32>, vector<32x32xf32>, vector<16x32xf32> -> vector<16x32xf32>
    %11 = vector.shape_cast %10 : vector<16x32xf32> to vector<8x2x32xf32>
    %12 = vector.shape_cast %5 : vector<2x32xf32> to vector<1x2x32xf32>
    %13 = vector.broadcast %12 : vector<1x2x32xf32> to vector<8x2x32xf32>
    %14 = arith.addf %11, %13 : vector<8x2x32xf32>
    %15 = math.tanh %14 : vector<8x2x32xf32>
    %16 = vector.shape_cast %7 : vector<1x32xf32> to vector<1x1x32xf32>
    %17 = vector.broadcast %16 : vector<1x1x32xf32> to vector<8x2x32xf32>
    %18 = arith.mulf %15, %17 : vector<8x2x32xf32>
    %cst_12 = arith.constant dense<0.000000e+00> : vector<8x2xf32>
    %19 = vector.multi_reduction <add>, %18, %cst_12 [2] : vector<8x2x32xf32> to vector<8x2xf32>
    %20 = tpu.transpose %19, [1, 0] : vector<8x2xf32> -> vector<2x8xf32>
    %cst_13 = arith.constant dense<0xFF800000> : vector<2xf32>
    %21 = vector.multi_reduction <maximumf>, %20, %cst_13 [1] : vector<2x8xf32> to vector<2xf32>
    %22 = vector.shape_cast %21 : vector<2xf32> to vector<2x1xf32>
    %23 = vector.broadcast %22 : vector<2x1xf32> to vector<2x8xf32>
    %24 = arith.subf %20, %23 : vector<2x8xf32>
    %25 = math.exp %24 : vector<2x8xf32>
    %cst_14 = arith.constant dense<0.000000e+00> : vector<2xf32>
    %26 = vector.multi_reduction <add>, %25, %cst_14 [1] : vector<2x8xf32> to vector<2xf32>
    %27 = vector.shape_cast %26 : vector<2xf32> to vector<2x1xf32>
    %28 = vector.broadcast %27 : vector<2x1xf32> to vector<2x8xf32>
    %29 = arith.divf %25, %28 : vector<2x8xf32>
    %c0_15 = arith.constant 0 : index
    %c0_16 = arith.constant 0 : index
    %30 = vector.load %arg6[%c0_15, %c0_16] : memref<2x8xf32, #tpu.memory_space<vmem>>, vector<2x8xf32>
    tpu.vector_store %arg6[%c0_15, %c0_16], %29 {strides = array<i32>} : memref<2x8xf32, #tpu.memory_space<vmem>>, vector<2x8xf32>,
    return
  }
  func.func @transform_0(%arg0: i32) -> (i32, i32) {
    %c0_i32 = arith.constant 0 : i32
    %c0_i32_0 = arith.constant 0 : i32
    return %arg0, %c0_i32 : i32, i32
  }
  func.func @transform_1(%arg0: i32) -> (i32, i32, i32) {
    %c0_i32 = arith.constant 0 : i32
    %c0_i32_0 = arith.constant 0 : i32
    %c0_i32_1 = arith.constant 0 : i32
    return %c0_i32, %arg0, %c0_i32_0 : i32, i32, i32
  }
  func.func @transform_2(%arg0: i32) -> (i32, i32) {
    %c0_i32 = arith.constant 0 : i32
    %c0_i32_0 = arith.constant 0 : i32
    %c0_i32_1 = arith.constant 0 : i32
    return %c0_i32, %c0_i32_0 : i32, i32
  }
  func.func @transform_3(%arg0: i32) -> (i32, i32) {
    %c0_i32 = arith.constant 0 : i32
    %c0_i32_0 = arith.constant 0 : i32
    %c0_i32_1 = arith.constant 0 : i32
    return %c0_i32, %c0_i32_0 : i32, i32
  }
  func.func @transform_4(%arg0: i32) -> (i32, i32) {
    %c0_i32 = arith.constant 0 : i32
    %c0_i32_0 = arith.constant 0 : i32
    %c0_i32_1 = arith.constant 0 : i32
    return %c0_i32, %c0_i32_0 : i32, i32
  }
  func.func @transform_5(%arg0: i32) -> (i32, i32) {
    %c0_i32 = arith.constant 0 : i32
    %c0_i32_0 = arith.constant 0 : i32
    return %arg0, %c0_i32 : i32, i32
  }
}

</mosaic_0001>

<bundles_post_ra>
// kernel: attention_forward.1
= control target key start
LH: loop header
LB: loop body
LE: loop exit
PB: predicated region body
PF: predicated region fallthrough
CT: control target
= control target key end

     0   :  { %v133_v3 = vlaneseq  ;;  %v557_v4 = vmov 0.0|0.0   ;;  %vm558_vm0 = vmmov 0   ;;  %v559_v9 = vmov 0.0   ;;  %s678_s0 = inlined_call_operand.vmem [shape: f32[2,32], index: 0, kind: input, shape index: {}]   ;;  %s679_s1 = inlined_call_operand.vmem [shape: f32[8,2,32], index: 1, kind: input, shape index: {}]   ;;  %s680_s2 = inlined_call_operand.vmem [shape: f32[64,32], index: 2, kind: input, shape index: {}]   ;;  %s681_s3 = inlined_call_operand.vmem [shape: f32[1,32], index: 3, kind: input, shape index: {}]   ;;  %s682_s4 = inlined_call_operand.vmem [shape: f32[1,32], index: 4, kind: input, shape index: {}]   ;;  %s683_s5 = inlined_call_operand.hbm [shape: f32[2,8], index: 5, kind: output, shape index: {}]  }
   0x1   :  { %v107_v0 = vld [vmem:[%s680_s2 + $0x20] sm:$0xff]  ;;  %v108_v1 = vld [vmem:[%s680_s2 + $0x28] sm:$0xff]  ;;  %494 = vmatprep.subr.bf16.mxu0 %v557_v4  ;;  %v109_v7 = vld [vmem:[%s680_s2 + $0x30] sm:$0xff]  ;;  %480 = vmatprep.mubr.msk.f32.mxu0 %vm558_vm0, %v559_v9  ;;  %v560_v15 = vmov 1983009808  }
   0x2   :  { %v22_v2 = vld [vmem:[%s680_s2] sm:$0xff]  ;;  %v500_v5 = vpack.c.bf16 %v108_v1, %v107_v0  ;;  %v23_v6 = vld [vmem:[%s680_s2 + $0x8] sm:$0xff]  ;;  %v110_v8 = vld [vmem:[%s680_s2 + $0x38] sm:$0xff]  ;;  %v131_v16 = vunpack.c.l.s4 %v560_v15  ;;  %v620_v17 = vshrl.u32 %v133_v3, 7 }
   0x3   :  { %v495_v10 = vpack.c.bf16 %v23_v6, %v22_v2  ;;  %v504_v11 = vpack.c.bf16 %v110_v8, %v109_v7  ;;  %v24_v12 = vld [vmem:[%s680_s2 + $0x10] sm:$0xff]  ;;  %v25_v13 = vld [vmem:[%s680_s2 + $0x18] sm:$0xff]  ;;  %v112_v14 = vld [vmem:[%s679_s1] sm:$0x3] }
   0x4   :  { %501 = vmatprep.subr.bf16.mxu1 %v500_v5  ;;  %v113_v18 = vld [vmem:[%s679_s1 + $0x2] sm:$0x3]  ;;  %v114_v19 = vld [vmem:[%s679_s1 + $0x4] sm:$0x3]  ;;  %v115_v20 = vld [vmem:[%s679_s1 + $0x6] sm:$0x3]  ;;  %v498_v21 = vpack.c.bf16 %v25_v13, %v24_v12  ;;  %v132_v24 = vunpack.c.0.s8 %v131_v16 }
   0x5   :  { %496 = vmatpush3.bf16.msra.mxu0 %v495_v10  ;;  %503 = vmatpush3.bf16.msra.mxu1 %v500_v5  ;;  %v128_v22 = vcombine.low %v112_v14, %v113_v18  ;;  %v129_v23 = vcombine.low %v114_v19, %v115_v20  ;;  %v116_v25 = vld [vmem:[%s679_s1 + $0x8] sm:$0x3]  ;;  %v117_v26 = vld [vmem:[%s679_s1 + $0xa] sm:$0x3]  ;;  %v118_v27 = vld [vmem:[%s679_s1 + $0xc] sm:$0x3] }
   0x6   :  { %497 = vmatprep.subr.bf16.mxu0 %v557_v4  ;;  %505 = vmatprep.subr.bf16.mxu1 %v504_v11  ;;  %v119_v28 = vld [vmem:[%s679_s1 + $0xe] sm:$0x3]  ;;  %v145_v29 = vcombine.low %v116_v25, %v117_v26  ;;  %v135_v30 = vsub.s32 %v132_v24, %v620_v17 }
   0x7   :  { %v146_v31 = vcombine.low %v118_v27, %v119_v28 }
   0x8   :  { %10 = vsyncpa [#allocation3], 0  ;;  %vm33_vm1 = vcmask 261120   ;;  %v136_v32 = vrot.slane %v128_v22, %v135_v30  ;;  %v143_v33 = vrot.slane %v129_v23, %v135_v30  ;;  %v21_v34 = vld [vmem:[%s678_s0] sm:$0x3]  ;;  %v153_v35 = vrot.slane %v145_v29, %v135_v30 }
   0x9   :  { %499 = vmatpush3.bf16.msra.mxu0 %v498_v21  ;;  %507 = vmatpush3.bf16.msra.mxu1 %v504_v11  ;;  %v160_v36 = vrot.slane %v146_v31, %v135_v30  ;;  %v456_v39 = vld [vmem:[%s681_s3] ss:$0 sm:$0xff]  ;;  %vm315_vm2 = vcmask 254976   ;;  %v349_v26 = vand.u32 127, %v133_v3  ;;  %vm382_vm3 = vcmask 1041409  }
   0xa   :  { %v144_v37 = vcombine.low %v136_v32, %v143_v33  ;;  %v460_v63 = vld [vmem:[%s682_s4] ss:$0 sm:$0xff]  ;;  %vm384_vm4 = vcmask 1042434   ;;  %vm386_vm5 = vcmask 1043459   ;;  %vm388_vm6 = vcmask 1044484   ;;  %s561_s4 = smov [#allocation2]  }
   0xb   :  { %v161_v38 = vcombine.low %v153_v35, %v160_v36  ;;  %v352_v29 = vsub.s32 %v349_v26, %v620_v17  ;;  %vm390_vm7 = vcmask 1045509   ;;  %vm392_vm8 = vcmask 1046534   ;;  %s448_s27 = sshll.u32 %s561_s4, 4  ;;  %s449_s27 = int_to_ptr.vmem [resolvable:$true] %s448_s27 }
   0xc   :  { %481 = vmatmul.mubr.msk.f32.vlgmr.msra.gmra.mrb[0].mxu0 %vm33_vm1, %v21_v34  ;;  %491 = vmatprep.mubr.msk.f32.mxu1 %vm33_vm1, %v144_v37  ;;  %vm394_vm9 = vcmask 1047559   ;;  %vm429_vm10 = vcmask 58368   ;;  %s533_s28 = scalar_lea.vmem %s449_s27, 32  ;;  %p538_p1 = scmp.lt.s32.totalorder %s449_s27, %s449_s27 }
   0xd   :  { %492 = vmatmul.mubr.msk.f32.vlgmr.msra.gmra.mrb[0].mxu1 %vm33_vm1, %v161_v38  ;;  %p534_p0 = scmp.ne.s32.totalorder %s449_s27, %s533_s28  ;;  %p539_p2 = scmp.lt.s32.totalorder %s533_s28, %s533_s28 }
   0xf   :  { %p540_p3 = por %p539_p2, %p538_p1 }
  0x11   :  { %p541_p4 = pnand %p540_p3, %p534_p0 }
  0xdf   :  { %v103_v40 = vpop.f32.mrb[0].mxu0 }
  0xe0   :  { %v104_v41 = vadd.f32 %v456_v39, %v103_v40  ;;  %v482_v42 = vpop.f32.mrb[1].mxu0  ;;  %v493_v43 = vpop.f32.mrb[0].mxu1 }
  0xe1   :  { %v260_v44 = vcombine.high %v493_v43, %v493_v43  ;;  %v267_v45 = vrot.slane %v493_v43, %v135_v30  ;;  %v232_v46 = vpop.f32.mrb[1].mxu1 }
  0xe2   :  { %v243_v47 = vcombine.high %v232_v46, %v232_v46  ;;  %v250_v48 = vrot.slane %v232_v46, %v135_v30 }
  0xe3   :  { %v274_v49 = vrot.slane %v260_v44, %v135_v30  ;;  %v275_v50 = vcombine.high %v267_v45, %v267_v45  ;;  %v289_v51 = vadd.f32 %v267_v45, %v104_v41 }
  0xe4   :  { %v257_v52 = vrot.slane %v243_v47, %v135_v30  ;;  %v258_v53 = vcombine.high %v250_v48, %v250_v48  ;;  %v285_v54 = vadd.f32 %v250_v48, %v104_v41 }
  0xe5   :  { %v276_v55 = vcombine.high %v274_v49, %v274_v49  ;;  %v290_v56 = vadd.f32 %v275_v50, %v104_v41  ;;  %v291_v57 = vadd.f32 %v274_v49, %v104_v41 }
  0xe6   :  { %v259_v58 = vcombine.high %v257_v52, %v257_v52  ;;  %v286_v59 = vadd.f32 %v258_v53, %v104_v41  ;;  %v287_v60 = vadd.f32 %v257_v52, %v104_v41  ;;  %513 = vtanh.f32 %v285_v54 }
  0xe7   :  { %v292_v61 = vadd.f32 %v276_v55, %v104_v41  ;;  %515 = vtanh.f32 %v290_v56 }
  0xe8   :  { %v288_v62 = vadd.f32 %v259_v58, %v104_v41  ;;  %517 = vtanh.f32 %v289_v51 }
  0xe9   :  { %519 = vtanh.f32 %v286_v59 }
  0xea   :  { %521 = vtanh.f32 %v287_v60 }
  0xeb   :  { %523 = vtanh.f32 %v288_v62 }
  0xec   :  { %525 = vtanh.f32 %v291_v57 }
  0xed   :  { %527 = vtanh.f32 %v292_v61 }
  0xf0   :  { %v514_v0 = vpop.eup %513 }
  0xf1   :  { %v516_v1 = vpop.eup %515  ;;  %v307_v2 = vmul.f32 %v514_v0, %v460_v63 }
  0xf2   :  { %v312_v4 = vmul.f32 %v516_v1, %v460_v63  ;;  %v518_v5 = vpop.eup %517 }
  0xf3   :  { %v316_v6 = vsel %vm315_vm2, %v307_v2, 0.0  ;;  %v520_v7 = vpop.eup %519  ;;  %v311_v14 = vmul.f32 %v518_v5, %v460_v63 }
  0xf4   :  { %317 = vadd.xlane.f32.xlu0 %v316_v6  ;;  %v331_v8 = vsel %vm315_vm2, %v312_v4, 0.0  ;;  %v522_v9 = vpop.eup %521  ;;  %v308_v10 = vmul.f32 %v520_v7, %v460_v63 }
  0xf5   :  { %332 = vadd.xlane.f32.xlu1 %v331_v8  ;;  %v524_v11 = vpop.eup %523  ;;  %v309_v12 = vmul.f32 %v522_v9, %v460_v63  ;;  %v328_v20 = vsel %vm315_vm2, %v311_v14, 0.0 }
  0xf6   :  { %v319_v13 = vsel %vm315_vm2, %v308_v10, 0.0  ;;  %v526_v15 = vpop.eup %525  ;;  %v310_v18 = vmul.f32 %v524_v11, %v460_v63 }
  0xf7   :  { %v322_v16 = vsel %vm315_vm2, %v309_v12, 0.0  ;;  %v528_v19 = vpop.eup %527  ;;  %v313_v21 = vmul.f32 %v526_v15, %v460_v63 }
  0xf8   :  { %320 = vadd.xlane.f32.xlu0 %v319_v13  ;;  %v325_v22 = vsel %vm315_vm2, %v310_v18, 0.0  ;;  %v314_v23 = vmul.f32 %v528_v19, %v460_v63 }
  0xf9   :  { %323 = vadd.xlane.f32.xlu1 %v322_v16  ;;  %v334_v24 = vsel %vm315_vm2, %v313_v21, 0.0 }
  0xfa   :  { %v337_v25 = vsel %vm315_vm2, %v314_v23, 0.0 }
  0xfc   :  { %329 = vadd.xlane.f32.xlu0 %v328_v20 }
  0xfd   :  { %326 = vadd.xlane.f32.xlu1 %v325_v22 }
 0x100   :  { %335 = vadd.xlane.f32.xlu0 %v334_v24 }
 0x101   :  { %338 = vadd.xlane.f32.xlu1 %v337_v25 }
 0x181   :  { %v318_v27 = vpop.xlane.xlu0 %317 }
 0x182   :  { %v333_v28 = vpop.xlane.xlu1 %332  ;;  %v353_v33 = vrot.slane %v318_v27, %v352_v29 }
 0x183   :  { %v373_v3 = vrot.slane %v333_v28, %v352_v29 }
 0x185   :  { %v321_v30 = vpop.xlane.xlu0 %320 }
 0x186   :  { %v357_v31 = vrot.slane %v321_v30, %v352_v29  ;;  %v324_v32 = vpop.xlane.xlu1 %323 }
 0x187   :  { %v361_v34 = vrot.slane %v324_v32, %v352_v29 }
 0x188   :  { %v383_v35 = vsel %vm382_vm3, %v357_v31, %v353_v33 }
 0x189   :  { %v330_v36 = vpop.xlane.xlu0 %329  ;;  %v385_v39 = vsel %vm384_vm4, %v361_v34, %v383_v35 }
 0x18a   :  { %v327_v37 = vpop.xlane.xlu1 %326  ;;  %v369_v40 = vrot.slane %v330_v36, %v352_v29 }
 0x18b   :  { %v365_v38 = vrot.slane %v327_v37, %v352_v29 }
 0x18d   :  { %v387_v41 = vsel %vm386_vm5, %v365_v38, %v385_v39  ;;  %v336_v42 = vpop.xlane.xlu0 %335 }
 0x18e   :  { %v377_v17 = vrot.slane %v336_v42, %v352_v29  ;;  %v339_v43 = vpop.xlane.xlu1 %338  ;;  %v389_v44 = vsel %vm388_vm6, %v369_v40, %v387_v41 }
 0x18f   :  { %v381_v45 = vrot.slane %v339_v43, %v352_v29  ;;  %v391_v46 = vsel %vm390_vm7, %v373_v3, %v389_v44 }
 0x190   :  { %v393_v47 = vsel %vm392_vm8, %v377_v17, %v391_v46 }
 0x191   :  { %v395_v48 = vsel %vm394_vm9, %v381_v45, %v393_v47 }
 0x192   :  { %397 = vxpose.xlu0.b32.start.end [1/1] (short) (narrow) %v395_v48, 8 }
 0x212   :  { %v413_v49 = vpop.trf.xlu0 }
 0x213   :  { %v430_v50 = vsel %vm429_vm10, %v413_v49, -inf }
 0x214   :  { %431 = vmax.xlane.f32.xlu1 %v430_v50 }
 0x2a1   :  { %v432_v51 = vpop.xlane.xlu1 %431 }
 0x2a2   :  { %v433_v52 = vsub.f32 %v413_v49, %v432_v51 }
 0x2a4   :  { %v434_v53 = vmul.f32 1.442695, %v433_v52 }
 0x2a6   :  { %529 = vpow2.f32 %v434_v53 }
 0x2b0   :  { %v530_v54 = vpop.eup %529 }
 0x2b1   :  { %v436_v55 = vsel %vm429_vm10, %v530_v54, 0.0 }
 0x2b2   :  { %437 = vadd.xlane.f32.xlu1 %v436_v55 }
 0x33f   :  { %v438_v56 = vpop.xlane.xlu1 %437 }
 0x340   :  { %531 = vrcp.f32 %v438_v56 }
 0x34a   :  { %v532_v57 = vpop.eup %531 }
 0x34b   :  { %v440_v58 = vmul.f32 %v532_v57, %v530_v54 }
 0x34d   :  { %441 = vst.msk [vmem:[#allocation2] sm:$0x3] %vm429_vm10, %v440_v58 }
 0x34e   :  { %544 = shalt.err (!%p541_p4)
}
 0x34f   :  { %s545_s6 = scalar_lea.hbm %s683_s5, 32 }
 0x350   :  { %p546_p5 = scmp.ne.s32.totalorder %s683_s5, %s545_s6  ;;  %p549_p6 = scmp.lt.u32.totalorder %s545_s6, %s683_s5 }
 0x352   :  { %p551_p7 = pnand %p549_p6, %p546_p5 }
 0x354   :  { %554 = shalt.err (!%p551_p7)
}
 0x355   :  { %451 = dma.vmem_to_hbm [thread:$0]  %s449_s27, 32, %s683_s5, [#allocation3]  }
 0x356   :  { %555 = dma.done.wait [#allocation3], 32  }
 0x357   :  { %556 = vsyncadd [#allocation3], 4294967264 }
 0x358   :  { %455 = vsyncpa [#allocation3], 1 }

</bundles_post_ra>
